<compile_context>
chip_gen: v7x
topology: tpu7x:2x2x1
jax: 0.10.0
libtpu: 0.0.40
codegen_flags: <defaults>
</compile_context>

<pallas_src>
import functools

import jax
import jax.numpy as jnp
from jax.experimental import pallas as pl
from jax.experimental.pallas import tpu as pltpu

C_PAD = 128  # lane-dense channel padding for all weight/feature matrices


# ----------------------------------------------------------------------------
# Fused 2-layer GCN kernel
# ----------------------------------------------------------------------------
def fused_gcn_kernel(adj_ref, xw1_ref, b1_ref, w2_ref, b2_ref,
                     o_ref, hw2_ref, *, tm):
    # adj_ref : [TM, N_pad]   int8 (or bf16)  row strip of quantized Ahat, tile i
    # xw1_ref : [N_pad, 128]  bf16            (X @ W1) * adj_scale   (resident)
    # b1_ref  : [1, 128]      f32             (resident)
    # w2_ref  : [128, 128]    bf16            W2 * adj_scale         (resident)
    # b2_ref  : [1, 128]      f32             (resident)
    # o_ref   : [TM, 128]     f32             written in phase 1 only
    # hw2_ref : [N_pad, 128]  bf16            VMEM scratch: relu(Ahat @ XW1 + b1) @ W2
    p = pl.program_id(0)  # 0: layer 1, 1: layer 2
    i = pl.program_id(1)  # row-tile index
    row0 = pl.multiple_of(i * tm, tm)

    # Dequantization scale is folded into xw1/w2, so a plain cast suffices here.
    a = adj_ref[...].astype(jnp.bfloat16)

    @pl.when(p == 0)
    def _layer1():
        h = jnp.dot(a, xw1_ref[...], preferred_element_type=jnp.float32) + b1_ref[...]
        h = jnp.maximum(h, 0.0)  # ReLU; Dropout(0.1) is identity in eval mode.
        # Fold the second projection in immediately: only HW2 is kept on-chip.
        hw2_ref[pl.ds(row0, tm), :] = jnp.dot(
            h.astype(jnp.bfloat16), w2_ref[...],
            preferred_element_type=jnp.float32).astype(hw2_ref.dtype)

    @pl.when(p == 1)
    def _layer2():
        o_ref[...] = (jnp.dot(a, hw2_ref[...],
                              preferred_element_type=jnp.float32)
                      + b2_ref[...])


def _round_up(x, m):
    return (x + m - 1) // m * m


def _pick_row_tile(n_pad, tm_max):
    tm = min(tm_max, n_pad)
    while n_pad % tm:
        tm -= 128
    return tm


def fused_gnn(adj_pad, x, w1, b1, w2, b2, *, tm_max=256, quantize_adj=True):
    """adj_pad: (n_pad, n_pad) f32 symmetrically-normalized adjacency (zero padded)."""
    n, in_c = x.shape
    hid_c = w1.shape[1]
    out_c = w2.shape[1]
    n_pad = adj_pad.shape[0]

    tm = _pick_row_tile(n_pad, tm_max)   # TM = N_pad for the small demo case
    n_tiles = n_pad // tm
    bf16 = jnp.bfloat16

    # ---- adjacency streaming dtype (int8 halves the dominant HBM stream) ----
    if quantize_adj:
        scale = jnp.maximum(jnp.max(jnp.abs(adj_pad)), 1e-12) / 127.0
        adj_s = jnp.round(adj_pad / scale).astype(jnp.int8)
    else:
        scale = jnp.float32(1.0)
        adj_s = adj_pad.astype(bf16)

    # ---- precompute X @ W1 once (plain XLA); fold dequant scale into XW1 / W2 ----
    xw1 = x.astype(jnp.float32) @ w1.astype(jnp.float32)              # (n, hid)
    xw1_p = (jnp.pad(xw1, ((0, n_pad - n), (0, C_PAD - hid_c))) * scale).astype(bf16)
    w2_p = (jnp.pad(w2, ((0, C_PAD - hid_c), (0, C_PAD - out_c))) * scale).astype(bf16)
    b1_p = jnp.pad(b1.astype(jnp.float32), (0, C_PAD - hid_c)).reshape(1, C_PAD)
    b2_p = jnp.pad(b2.astype(jnp.float32), (0, C_PAD - out_c)).reshape(1, C_PAD)

    out_p = pl.pallas_call(
        functools.partial(fused_gcn_kernel, tm=tm),
        out_shape=jax.ShapeDtypeStruct((n_pad, C_PAD), jnp.float32),
        grid_spec=pltpu.PrefetchScalarGridSpec(
            num_scalar_prefetch=0,
            grid=(2, n_tiles),   # (phase, row tile)
            in_specs=[
                pl.BlockSpec((tm, n_pad), lambda p, i: (i, 0)),      # Ahat row strip
                pl.BlockSpec((n_pad, C_PAD), lambda p, i: (0, 0)),   # X@W1 (resident)
                pl.BlockSpec((1, C_PAD), lambda p, i: (0, 0)),       # b1
                pl.BlockSpec((C_PAD, C_PAD), lambda p, i: (0, 0)),   # W2
                pl.BlockSpec((1, C_PAD), lambda p, i: (0, 0)),       # b2
            ],
            # Phase 0 never writes the output; its block index is pinned at 0 so the
            # buffer is not flushed until phase 1 has overwritten tile 0, then the
            # index walks the tiles (canonical "same block index until done" pattern).
            out_specs=pl.BlockSpec((tm, C_PAD), lambda p, i: (i * p, 0)),
            scratch_shapes=[
                pltpu.VMEM((n_pad, C_PAD), jnp.bfloat16),  # HW2 = relu(A@XW1+b1) @ W2
            ],
        ),
        compiler_params=pltpu.CompilerParams(
            # Phase axis is sequential by construction; the row-tile axis carries a
            # dependency through the HW2 scratch, so it must stay "arbitrary".
            dimension_semantics=("arbitrary", "arbitrary"),
            vmem_limit_bytes=48 * 1024 * 1024,
        ),
    )(adj_s, xw1_p, b1_p, w2_p, b2_p)

    return out_p[:n, :out_c]


# ----------------------------------------------------------------------------
# Glue: dense GCN-normalized adjacency (self-loops + symmetric normalization),
# built directly at the padded shape so no extra N_pad^2 f32 copy is needed.
# ----------------------------------------------------------------------------
def gcn_norm_adj_padded(edge_index, num_nodes, num_nodes_padded):
    src = edge_index[0]
    dst = edge_index[1]
    loop = jnp.arange(num_nodes, dtype=edge_index.dtype)
    src = jnp.concatenate([src, loop])
    dst = jnp.concatenate([dst, loop])
    deg = jnp.zeros((num_nodes_padded,), jnp.float32).at[dst].add(1.0)
    dinv = jnp.where(deg > 0, 1.0 / jnp.sqrt(deg), 0.0)
    norm = dinv[src] * dinv[dst]
    # message flows source -> target; row = target node, col = source node
    adj = jnp.zeros((num_nodes_padded, num_nodes_padded),
                    jnp.float32).at[dst, src].add(norm)
    return adj


# ----------------------------------------------------------------------------
# GNN forward: GCNConv(in->hid) -> ReLU -> Dropout(eval) -> GCNConv(hid->out)
# ----------------------------------------------------------------------------
def gnn_forward(x, edge_index, params):
    n = x.shape[0]
    n_pad = _round_up(n, 128)
    adj = gcn_norm_adj_padded(edge_index, n, n_pad)
    return fused_gnn(adj, x,
                     params["w1"], params["b1"],
                     params["w2"], params["b2"])


def glorot(key, shape):
    fan_in, fan_out = shape
    limit = jnp.sqrt(6.0 / (fan_in + fan_out))
    return jax.random.uniform(key, shape, jnp.float32, -limit, limit)


if __name__ == "__main__":
    # Small, module-consistent shapes (node dim chosen lane-aligned).
    N = 128               # number of graph nodes
    IN_C, HID_C, OUT_C = 8, 32, 8

    key = jax.random.PRNGKey(0)
    kx, kw1, kw2 = jax.random.split(key, 3)

    # Node features [N, IN_C]
    x = jax.random.normal(kx, (N, IN_C), jnp.float32)

    # Deterministic undirected ring graph -> edge_index [2, 2N]
    idx = jnp.arange(N, dtype=jnp.int32)
    src = jnp.concatenate([idx, (idx + 1) % N])
    dst = jnp.concatenate([(idx + 1) % N, idx])
    edge_index = jnp.stack([src, dst], axis=0)

    # Deterministic parameters (GCNConv: glorot weights, zero bias)
    params = {
        "w1": glorot(kw1, (IN_C, HID_C)),
        "b1": jnp.zeros((HID_C,), jnp.float32),
        "w2": glorot(kw2, (HID_C, OUT_C)),
        "b2": jnp.zeros((OUT_C,), jnp.float32),
    }

    out = jax.jit(gnn_forward)(x, edge_index, params)
    jax.block_until_ready(out)
    assert out.shape == (N, OUT_C)

    # Pure-JAX f32 reference (same GCN semantics) — tolerance covers bf16 + int8 adj.
    adj_ref = gcn_norm_adj_padded(edge_index, N, _round_up(N, 128))[:N, :N]
    h_ref = jax.nn.relu(adj_ref @ (x @ params["w1"]) + params["b1"])
    ref = adj_ref @ (h_ref @ params["w2"]) + params["b2"]
    max_err = float(jnp.max(jnp.abs(out - ref)))
    assert max_err < 5e-2, f"max abs error {max_err} too large"

    print("KERNEL_OK")
</pallas_src>

<mosaic_0001>
module attributes {stable_mosaic.version = 11 : i64} {
  func.func private @main(%arg0: i32) attributes {dimension_semantics = [#tpu.dimension_semantics<core_parallel>], iteration_bounds = array<i64: 2>, tpu.core_type = #tpu.core_type<sc_scalar_subcore>, window_params = []} {
    return
  }
}

module attributes {stable_mosaic.version = 11 : i64} {
  func.func private @main(%arg0: i32) attributes {dimension_semantics = [#tpu.dimension_semantics<core_parallel>], iteration_bounds = array<i64: 2>, tpu.core_type = #tpu.core_type<sc_scalar_subcore>, window_params = []} {
    return
  }
}

module attributes {stable_mosaic.version = 11 : i64} {
  func.func @fused_gcn_kernel(%arg0: i32, %arg1: i32, %arg2: memref<128x128xi8, #tpu.memory_space<vmem>>, %arg3: memref<128x128xbf16, #tpu.memory_space<vmem>>, %arg4: memref<1x128xf32, #tpu.memory_space<vmem>>, %arg5: memref<128x128xbf16, #tpu.memory_space<vmem>>, %arg6: memref<1x128xf32, #tpu.memory_space<vmem>>, %arg7: memref<128x128xf32, #tpu.memory_space<vmem>>, %arg8: memref<128x128xbf16, #tpu.memory_space<vmem>>) attributes {dimension_semantics = [#tpu.dimension_semantics<arbitrary>, #tpu.dimension_semantics<arbitrary>], iteration_bounds = array<i64: 2, 1>, scalar_prefetch = 0 : i64, scratch_operands = 1 : i64, tpu.core_type = #tpu.core_type<tc>, window_params = [{transform_indices = @transform_0, window_bounds = array<i64: 128, 128>}, {pipeline_mode = #tpu.pipeline_mode<synchronous>, transform_indices = @transform_1, window_bounds = array<i64: 128, 128>}, {pipeline_mode = #tpu.pipeline_mode<synchronous>, transform_indices = @transform_2, window_bounds = array<i64: 1, 128>}, {pipeline_mode = #tpu.pipeline_mode<synchronous>, transform_indices = @transform_3, window_bounds = array<i64: 128, 128>}, {pipeline_mode = #tpu.pipeline_mode<synchronous>, transform_indices = @transform_4, window_bounds = array<i64: 1, 128>}, {transform_indices = @transform_5, window_bounds = array<i64: 128, 128>}]} {
    %c128_i32 = arith.constant 128 : i32
    %0 = arith.muli %arg1, %c128_i32 : i32
    %1 = tpu.assume_multiple %0, 128 : i32
    %c0 = arith.constant 0 : index
    %c0_0 = arith.constant 0 : index
    %2 = vector.load %arg2[%c0, %c0_0] : memref<128x128xi8, #tpu.memory_space<vmem>>, vector<128x128xi8>
    %3 = arith.sitofp %2 : vector<128x128xi8> to vector<128x128xbf16>
    %c0_i32 = arith.constant 0 : i32
    %4 = arith.cmpi eq, %arg0, %c0_i32 : i32
    %5 = arith.extui %4 : i1 to i32
    %c0_i32_1 = arith.constant 0 : i32
    %6 = arith.cmpi ne, %5, %c0_i32_1 : i32
    scf.if %6 {
      %c0_3 = arith.constant 0 : index
      %c0_4 = arith.constant 0 : index
      %10 = vector.load %arg3[%c0_3, %c0_4] : memref<128x128xbf16, #tpu.memory_space<vmem>>, vector<128x128xbf16>
      %cst = arith.constant dense<0.000000e+00> : vector<128x128xf32>
      %11 = tpu.matmul %3, %10, %cst {dimension_numbers = #tpu.dot_dimension_numbers<[1], [0], [0], [1], [0, 0, 1, 1], [], []>} : vector<128x128xbf16>, vector<128x128xbf16>, vector<128x128xf32> -> vector<128x128xf32>
      %c0_5 = arith.constant 0 : index
      %c0_6 = arith.constant 0 : index
      %12 = vector.load %arg4[%c0_5, %c0_6] : memref<1x128xf32, #tpu.memory_space<vmem>>, vector<1x128xf32>
      %13 = vector.broadcast %12 : vector<1x128xf32> to vector<128x128xf32>
      %14 = arith.addf %11, %13 : vector<128x128xf32>
      %cst_7 = arith.constant 0.000000e+00 : f32
      %15 = vector.broadcast %cst_7 : f32 to vector<128x128xf32>
      %16 = arith.maximumf %14, %15 : vector<128x128xf32>
      %17 = arith.truncf %16 : vector<128x128xf32> to vector<128x128xbf16>
      %c0_8 = arith.constant 0 : index
      %c0_9 = arith.constant 0 : index
      %18 = vector.load %arg5[%c0_8, %c0_9] : memref<128x128xbf16, #tpu.memory_space<vmem>>, vector<128x128xbf16>
      %cst_10 = arith.constant dense<0.000000e+00> : vector<128x128xf32>
      %19 = tpu.matmul %17, %18, %cst_10 {dimension_numbers = #tpu.dot_dimension_numbers<[1], [0], [0], [1], [0, 0, 1, 1], [], []>} : vector<128x128xbf16>, vector<128x128xbf16>, vector<128x128xf32> -> vector<128x128xf32>
      %20 = arith.truncf %19 : vector<128x128xf32> to vector<128x128xbf16>
      %21 = arith.index_cast %1 : i32 to index
      %c0_11 = arith.constant 0 : index
      %22 = vector.load %arg8[%21, %c0_11] : memref<128x128xbf16, #tpu.memory_space<vmem>>, vector<128x128xbf16>
      tpu.vector_store %arg8[%21, %c0_11], %20 {strides = array<i32>} : memref<128x128xbf16, #tpu.memory_space<vmem>>, vector<128x128xbf16>,
    } else {
    }
    %c1_i32 = arith.constant 1 : i32
    %7 = arith.cmpi eq, %arg0, %c1_i32 : i32
    %8 = arith.extui %7 : i1 to i32
    %c0_i32_2 = arith.constant 0 : i32
    %9 = arith.cmpi ne, %8, %c0_i32_2 : i32
    scf.if %9 {
      %c0_3 = arith.constant 0 : index
      %c0_4 = arith.constant 0 : index
      %10 = vector.load %arg8[%c0_3, %c0_4] : memref<128x128xbf16, #tpu.memory_space<vmem>>, vector<128x128xbf16>
      %cst = arith.constant dense<0.000000e+00> : vector<128x128xf32>
      %11 = tpu.matmul %3, %10, %cst {dimension_numbers = #tpu.dot_dimension_numbers<[1], [0], [0], [1], [0, 0, 1, 1], [], []>} : vector<128x128xbf16>, vector<128x128xbf16>, vector<128x128xf32> -> vector<128x128xf32>
      %c0_5 = arith.constant 0 : index
      %c0_6 = arith.constant 0 : index
      %12 = vector.load %arg6[%c0_5, %c0_6] : memref<1x128xf32, #tpu.memory_space<vmem>>, vector<1x128xf32>
      %13 = vector.broadcast %12 : vector<1x128xf32> to vector<128x128xf32>
      %14 = arith.addf %11, %13 : vector<128x128xf32>
      %c0_7 = arith.constant 0 : index
      %c0_8 = arith.constant 0 : index
      %15 = vector.load %arg7[%c0_7, %c0_8] : memref<128x128xf32, #tpu.memory_space<vmem>>, vector<128x128xf32>
      tpu.vector_store %arg7[%c0_7, %c0_8], %14 {strides = array<i32>} : memref<128x128xf32, #tpu.memory_space<vmem>>, vector<128x128xf32>,
    } else {
    }
    return
  }
  func.func @transform_0(%arg0: i32, %arg1: i32) -> (i32, i32) {
    %c0_i32 = arith.constant 0 : i32
    %c0_i32_0 = arith.constant 0 : i32
    return %arg1, %c0_i32 : i32, i32
  }
  func.func @transform_1(%arg0: i32, %arg1: i32) -> (i32, i32) {
    %c0_i32 = arith.constant 0 : i32
    %c0_i32_0 = arith.constant 0 : i32
    %c0_i32_1 = arith.constant 0 : i32
    return %c0_i32, %c0_i32_0 : i32, i32
  }
  func.func @transform_2(%arg0: i32, %arg1: i32) -> (i32, i32) {
    %c0_i32 = arith.constant 0 : i32
    %c0_i32_0 = arith.constant 0 : i32
    %c0_i32_1 = arith.constant 0 : i32
    return %c0_i32, %c0_i32_0 : i32, i32
  }
  func.func @transform_3(%arg0: i32, %arg1: i32) -> (i32, i32) {
    %c0_i32 = arith.constant 0 : i32
    %c0_i32_0 = arith.constant 0 : i32
    %c0_i32_1 = arith.constant 0 : i32
    return %c0_i32, %c0_i32_0 : i32, i32
  }
  func.func @transform_4(%arg0: i32, %arg1: i32) -> (i32, i32) {
    %c0_i32 = arith.constant 0 : i32
    %c0_i32_0 = arith.constant 0 : i32
    %c0_i32_1 = arith.constant 0 : i32
    return %c0_i32, %c0_i32_0 : i32, i32
  }
  func.func @transform_5(%arg0: i32, %arg1: i32) -> (i32, i32) {
    %0 = arith.muli %arg1, %arg0 : i32
    %c0_i32 = arith.constant 0 : i32
    %c0_i32_0 = arith.constant 0 : i32
    return %0, %c0_i32 : i32, i32
  }
}

</mosaic_0001>

<bundles_post_ra>
// kernel: mul.5
= control target key start
LH: loop header
LB: loop body
LE: loop exit
PB: predicated region body
PF: predicated region fallthrough
CT: control target
= control target key end

     0   :  { %s34_s0 = inlined_call_operand.vmem [shape: f32[384], index: 0, kind: input, shape index: {}]   ;;  %s35_s1 = inlined_call_operand.vmem [shape: f32[384], index: 1, kind: input, shape index: {}]   ;;  %s36_s2 = inlined_call_operand.vmem [shape: f32[384], index: 2, kind: output, shape index: {}]  }
   0x1   :  { %v3_v0 = vld [vmem:[%s34_s0] sm:$0x7] }
   0x2   :  { %v4_v1 = vld [vmem:[%s35_s1] sm:$0x7] }
   0x3   :  { %v7_v2 = vmul.f32 %v4_v1, %v3_v0 }
   0x5   :  { %9 = vst [vmem:[%s36_s2] sm:$0xf] %v7_v2 }

// kernel: gnn_forward.1
= control target key start
LH: loop header
LB: loop body
LE: loop exit
PB: predicated region body
PF: predicated region fallthrough
CT: control target
= control target key end

     0   :  { %s1124_s18 = smov 0   ;;  %s1126_s19 = smov 0   ;;  %s1317_s0 = inlined_call_operand.vmem [shape: s8[128,128], index: 0, kind: input, shape index: {}]   ;;  %s1318_s1 = inlined_call_operand.vmem [shape: bf16[128,128], index: 1, kind: input, shape index: {}]   ;;  %s1319_s2 = inlined_call_operand.vmem [shape: f32[1,128], index: 2, kind: input, shape index: {}]   ;;  %s1320_s3 = inlined_call_operand.vmem [shape: bf16[128,128], index: 3, kind: input, shape index: {}]   ;;  %s1321_s4 = inlined_call_operand.vmem [shape: f32[1,128], index: 4, kind: input, shape index: {}]   ;;  %s1322_s5 = inlined_call_operand.vmem [shape: f32[128,128], index: 5, kind: output, shape index: {}]  }
   0x1   :  { %s1128_s20 = smov 0  }
   0x2 LB: > { %s27_s21 = sadd.s32 1, %s1088_s19  ;;  %p845_p0 = scmp.ge.s32.totalorder %s1092_s20, 1  ;;  %s1092_s20 = sphi %s1128_s20, %s15_s20   ;;  %s1088_s19 = sphi %s1126_s19, %s1324_s19   ;;  %s1084_s18 = sphi %s1124_s18, %s1323_s18  }
   0x3   : > { %p29_p1 = scmp.ge.s32.totalorder %s27_s21, 2  ;;  %p202_p2 = scmp.lt.s32.totalorder %s1092_s20, 3 }
   0x5   : > { %s1326_s21 = smov (%p29_p1, %s27_s21), 0  ;;  %p203_p3 = pnand %p845_p0, %p202_p2 }
   0x6   : > { %v1147_v0 = vld [vmem:[%s1317_s0] sm:$0xff] (!%p203_p3)  ;;  %v1152_v1 = vld [vmem:[%s1317_s0 + $0x8] sm:$0xff] (!%p203_p3)  ;;  %v1157_v2 = vld [vmem:[%s1317_s0 + $0x10] sm:$0xff] (!%p203_p3)  ;;  %p846_p4 = scmp.ne.s32.totalorder (!%p203_p3), %s1084_s18, 0 }
   0x7   : > { %206 = sbr.rel (%p203_p3) target bundleno = 771 (0x303), region = 40  ;;  %v1162_v3 = vld [vmem:[%s1317_s0 + $0x18] sm:$0xff] (!%p203_p3)  ;;  %v251_v4 = vunpack.c.l.s8.bf16 (!%p203_p3), %v1147_v0  ;;  %v252_v5 = vunpack.c.h.s8.bf16 (!%p203_p3), %v1147_v0  ;;  %v253_v6 = vunpack.c.l.s8.bf16 (!%p203_p3), %v1152_v1  ;;  %v254_v7 = vunpack.c.h.s8.bf16 (!%p203_p3), %v1152_v1 }
   0x8   : > { %v255_v8 = vunpack.c.l.s8.bf16 (!%p203_p3), %v1157_v2  ;;  %v256_v9 = vunpack.c.h.s8.bf16 (!%p203_p3), %v1157_v2  ;;  %v257_v10 = vunpack.c.l.s8.bf16 (!%p203_p3), %v1162_v3  ;;  %v258_v11 = vunpack.c.h.s8.bf16 (!%p203_p3), %v1162_v3 }
   0xe   : > { %262 = sbr.rel (%p846_p4) target bundleno = 511 (0x1ff), region = 44  ;;  %v1054_v12 = vld [vmem:[%s1318_s1] sm:$0xff] (!%p846_p4)   ;;  %934 = vmatprep.mubr.bf16.mxu0 (!%p846_p4), %v251_v4  ;;  %v1055_v13 = vld [vmem:[%s1318_s1 + $0x8] sm:$0xff] (!%p846_p4)   ;;  %v1056_v14 = vld [vmem:[%s1318_s1 + $0x10] sm:$0xff] (!%p846_p4)  }
   0xf   : > { %918 = vmatprep.subr.bf16.mxu0 (!%p846_p4), %v1054_v12  ;;  %v1057_v15 = vld [vmem:[%s1318_s1 + $0x18] sm:$0xff] (!%p846_p4)   ;;  %v1062_v16 = vld [vmem:[%s1320_s3] sm:$0xff] (!%p846_p4)   ;;  %v1063_v17 = vld [vmem:[%s1320_s3 + $0x8] sm:$0xff] (!%p846_p4)  }
  0x10   : > { %919 = vmatpush3.bf16.msra.mxu0 (!%p846_p4), %v1054_v12  ;;  %950 = vmatprep.subr.bf16.mxu1 (!%p846_p4), %v1062_v16  ;;  %v1058_v18 = vld [vmem:[%s1318_s1 + $0x20] sm:$0xff] (!%p846_p4)   ;;  %v1064_v19 = vld [vmem:[%s1320_s3 + $0x10] sm:$0xff] (!%p846_p4)   ;;  %v1059_v20 = vld [vmem:[%s1318_s1 + $0x28] sm:$0xff] (!%p846_p4)  }
  0x11   : > { %920 = vmatprep.subr.bf16.mxu0 (!%p846_p4), %v1055_v13  ;;  %951 = vmatpush3.bf16.msra.mxu1 (!%p846_p4), %v1062_v16  ;;  %v1065_v21 = vld [vmem:[%s1320_s3 + $0x18] sm:$0xff] (!%p846_p4)   ;;  %v1060_v22 = vld [vmem:[%s1318_s1 + $0x30] sm:$0xff] (!%p846_p4)   ;;  %v1066_v23 = vld [vmem:[%s1320_s3 + $0x20] sm:$0xff] (!%p846_p4)  }
  0x12   : > { %952 = vmatprep.subr.bf16.mxu1 (!%p846_p4), %v1063_v17  ;;  %v1061_v24 = vld [vmem:[%s1318_s1 + $0x38] sm:$0xff] (!%p846_p4)   ;;  %v1067_v25 = vld [vmem:[%s1320_s3 + $0x28] sm:$0xff] (!%p846_p4)   ;;  %v1068_v26 = vld [vmem:[%s1320_s3 + $0x30] sm:$0xff] (!%p846_p4)  }
  0x13   : > { %v1069_v27 = vld [vmem:[%s1320_s3 + $0x38] sm:$0xff] (!%p846_p4)   ;;  %v847_v28 = vld [vmem:[%s1319_s2] ss:$0 sm:$0xff] (!%p846_p4) }
  0x14   : > { %921 = vmatpush3.bf16.msra.mxu0 (!%p846_p4), %v1055_v13 }
  0x15   : > { %922 = vmatprep.subr.bf16.mxu0 %v1056_v14  ;;  %953 = vmatpush3.bf16.msra.mxu1 %v1063_v17 }
  0x16   : > { %954 = vmatprep.subr.bf16.mxu1 %v1064_v19 }
  0x18   : > { %923 = vmatpush3.bf16.msra.mxu0 %v1056_v14 }
  0x19   : > { %924 = vmatprep.subr.bf16.mxu0 %v1057_v15  ;;  %955 = vmatpush3.bf16.msra.mxu1 %v1064_v19 }
  0x1a   : > { %956 = vmatprep.subr.bf16.mxu1 %v1065_v21 }
  0x1c   : > { %925 = vmatpush3.bf16.msra.mxu0 %v1057_v15 }
  0x1d   : > { %926 = vmatprep.subr.bf16.mxu0 %v1058_v18  ;;  %957 = vmatpush3.bf16.msra.mxu1 %v1065_v21 }
  0x1e   : > { %958 = vmatprep.subr.bf16.mxu1 %v1066_v23 }
  0x20   : > { %927 = vmatpush3.bf16.msra.mxu0 %v1058_v18 }
  0x21   : > { %928 = vmatprep.subr.bf16.mxu0 %v1059_v20  ;;  %959 = vmatpush3.bf16.msra.mxu1 %v1066_v23 }
  0x22   : > { %960 = vmatprep.subr.bf16.mxu1 %v1067_v25 }
  0x24   : > { %929 = vmatpush3.bf16.msra.mxu0 %v1059_v20 }
  0x25   : > { %930 = vmatprep.subr.bf16.mxu0 %v1060_v22  ;;  %961 = vmatpush3.bf16.msra.mxu1 %v1067_v25 }
  0x26   : > { %962 = vmatprep.subr.bf16.mxu1 %v1068_v26 }
  0x28   : > { %931 = vmatpush3.bf16.msra.mxu0 %v1060_v22 }
  0x29   : > { %932 = vmatprep.subr.bf16.mxu0 %v1061_v24  ;;  %963 = vmatpush3.bf16.msra.mxu1 %v1068_v26 }
  0x2a   : > { %964 = vmatprep.subr.bf16.mxu1 %v1069_v27 }
  0x2c   : > { %933 = vmatpush3.bf16.msra.mxu0 %v1061_v24 }
  0x2d   : > { %965 = vmatpush3.bf16.msra.mxu1 %v1069_v27 }
  0x2f   : > { %935 = vmatmul.mubr.bf16.vlgmr.msra.gmra.mrb[0].mxu0 %v252_v5 }
  0x30   : > { %938 = vmatprep.mubr.bf16.mxu0 %v253_v6 }
  0x37   : > { %939 = vmatmul.mubr.bf16.gmra.mrb[4].mxu0 %v254_v7 }
  0x38   : > { %942 = vmatprep.mubr.bf16.mxu0 %v255_v8 }
  0x3f   : > { %943 = vmatmul.mubr.bf16.gmra.mrb[8].mxu0 %v256_v9 }
  0x40   : > { %946 = vmatprep.mubr.bf16.mxu0 %v257_v10 }
  0x47   : > { %947 = vmatmul.mubr.bf16.gmra.mrb[12].mxu0 %v258_v11 }
 0x102   : > { %v936_v29 = vpop.f32.mrb[0].mxu0 }
 0x103   : > { %v377_v30 = vadd.f32 %v936_v29, %v847_v28  ;;  %v368_v31 = vpop.f32.mrb[1].mxu0 }
 0x104   : > { %v369_v32 = vadd.f32 %v847_v28, %v368_v31  ;;  %v937_v33 = vpop.f32.mrb[2].mxu0 }
 0x105   : > { %v380_v34 = vadd.f32 %v937_v33, %v847_v28  ;;  %v371_v35 = vpop.f32.mrb[3].mxu0  ;;  %v433_v37 = vmax.f32 %v377_v30, 0.0 }
 0x106   : > { %v372_v36 = vadd.f32 %v847_v28, %v371_v35  ;;  %v431_v39 = vmax.f32 %v369_v32, 0.0 }
 0x107   : > { %v434_v38 = vmax.f32 %v380_v34, 0.0 }
 0x108   : > { %v432_v40 = vmax.f32 %v372_v36, 0.0 }
 0x109   : > { %v448_v41 = vpack.c.bf16 %v434_v38, %v433_v37 }
 0x10a   : > { %v940_v42 = vpop.f32.mrb[4].mxu0  ;;  %v447_v43 = vpack.c.bf16 %v432_v40, %v431_v39 }
 0x10b   : > { %v393_v44 = vadd.f32 %v940_v42, %v847_v28  ;;  %v384_v45 = vpop.f32.mrb[5].mxu0 }
 0x10c   : > { %v385_v46 = vadd.f32 %v847_v28, %v384_v45  ;;  %v941_v47 = vpop.f32.mrb[6].mxu0  ;;  %966 = vmatprep.mubr.bf16.mxu1 %v447_v43 }
 0x10d   : > { %v396_v48 = vadd.f32 %v941_v47, %v847_v28  ;;  %v387_v49 = vpop.f32.mrb[7].mxu0  ;;  %967 = vmatmul.mubr.bf16.vlgmr.msra.gmra.mrb[0].mxu1 %v448_v41  ;;  %v437_v51 = vmax.f32 %v393_v44, 0.0 }
 0x10e   : > { %v388_v50 = vadd.f32 %v847_v28, %v387_v49  ;;  %v435_v53 = vmax.f32 %v385_v46, 0.0 }
 0x10f   : > { %v438_v52 = vmax.f32 %v396_v48, 0.0 }
 0x110   : > { %v436_v54 = vmax.f32 %v388_v50, 0.0 }
 0x111   : > { %v450_v55 = vpack.c.bf16 %v438_v52, %v437_v51 }
 0x112   : > { %v449_v56 = vpack.c.bf16 %v436_v54, %v435_v53  ;;  %v944_v57 = vpop.f32.mrb[8].mxu0 }
 0x113   : > { %v409_v58 = vadd.f32 %v944_v57, %v847_v28  ;;  %v400_v59 = vpop.f32.mrb[9].mxu0 }
 0x114   : > { %v401_v60 = vadd.f32 %v847_v28, %v400_v59  ;;  %v945_v61 = vpop.f32.mrb[10].mxu0  ;;  %970 = vmatprep.mubr.bf16.mxu1 %v449_v56 }
 0x115   : > { %v412_v62 = vadd.f32 %v945_v61, %v847_v28  ;;  %v403_v63 = vpop.f32.mrb[11].mxu0  ;;  %971 = vmatmul.mubr.bf16.gmra.mrb[4].mxu1 %v450_v55  ;;  %v441_v13 = vmax.f32 %v409_v58, 0.0 }
 0x116   : > { %v404_v12 = vadd.f32 %v847_v28, %v403_v63  ;;  %v439_v15 = vmax.f32 %v401_v60, 0.0 }
 0x117   : > { %v442_v14 = vmax.f32 %v412_v62, 0.0 }
 0x118   : > { %v440_v16 = vmax.f32 %v404_v12, 0.0 }
 0x119   : > { %v452_v17 = vpack.c.bf16 %v442_v14, %v441_v13 }
 0x11a   : > { %v451_v18 = vpack.c.bf16 %v440_v16, %v439_v15  ;;  %v948_v19 = vpop.f32.mrb[12].mxu0 }
 0x11b   : > { %v425_v20 = vadd.f32 %v948_v19, %v847_v28  ;;  %v416_v21 = vpop.f32.mrb[13].mxu0 }
 0x11c   : > { %v417_v22 = vadd.f32 %v847_v28, %v416_v21  ;;  %v949_v23 = vpop.f32.mrb[14].mxu0  ;;  %974 = vmatprep.mubr.bf16.mxu1 %v451_v18 }
 0x11d   : > { %v428_v24 = vadd.f32 %v949_v23, %v847_v28  ;;  %v419_v25 = vpop.f32.mrb[15].mxu0  ;;  %975 = vmatmul.mubr.bf16.gmra.mrb[8].mxu1 %v452_v17  ;;  %v445_v27 = vmax.f32 %v425_v20, 0.0 }
 0x11e   : > { %v420_v26 = vadd.f32 %v847_v28, %v419_v25  ;;  %v443_v30 = vmax.f32 %v417_v22, 0.0 }
 0x11f   : > { %v446_v29 = vmax.f32 %v428_v24, 0.0 }
 0x120   : > { %v444_v31 = vmax.f32 %v420_v26, 0.0 }
 0x121   : > { %v454_v32 = vpack.c.bf16 %v446_v29, %v445_v27 }
 0x122   : > { %v453_v33 = vpack.c.bf16 %v444_v31, %v443_v30 }
 0x124   : > { %978 = vmatprep.mubr.bf16.mxu1 %v453_v33 }
 0x125   : > { %979 = vmatmul.mubr.bf16.gmra.mrb[12].mxu1 %v454_v32 }
 0x1e0   : > { %v968_v34 = vpop.f32.mrb[0].mxu1 }
 0x1e1   : > { %v553_v35 = vpop.f32.mrb[1].mxu1 }
 0x1e2   : > { %v969_v36 = vpop.f32.mrb[2].mxu1 }
 0x1e3   : > { %v617_v37 = vpack.c.bf16 %v969_v36, %v968_v34  ;;  %v556_v38 = vpop.f32.mrb[3].mxu1 }
 0x1e4   : > { %v616_v39 = vpack.c.bf16 %v556_v38, %v553_v35 }
 0x1e5   : > { %629 = vst [vmem:[#allocation2 + $0x8] sm:$0xff] %v617_v37 }
 0x1e6   : > { %628 = vst [vmem:[#allocation2] sm:$0xff] %v616_v39 }
 0x1e8   : > { %v972_v40 = vpop.f32.mrb[4].mxu1 }
 0x1e9   : > { %v569_v41 = vpop.f32.mrb[5].mxu1 }
 0x1ea   : > { %v973_v42 = vpop.f32.mrb[6].mxu1 }
 0x1eb   : > { %v619_v28 = vpack.c.bf16 %v973_v42, %v972_v40  ;;  %v572_v43 = vpop.f32.mrb[7].mxu1 }
 0x1ec   : > { %v618_v44 = vpack.c.bf16 %v572_v43, %v569_v41 }
 0x1ed   : > { %631 = vst [vmem:[#allocation2 + $0x18] sm:$0xff] %v619_v28 }
 0x1ee   : > { %630 = vst [vmem:[#allocation2 + $0x10] sm:$0xff] %v618_v44 }
 0x1f0   : > { %v976_v45 = vpop.f32.mrb[8].mxu1 }
 0x1f1   : > { %v585_v46 = vpop.f32.mrb[9].mxu1 }
 0x1f2   : > { %v977_v47 = vpop.f32.mrb[10].mxu1 }
 0x1f3   : > { %v621_v48 = vpack.c.bf16 %v977_v47, %v976_v45  ;;  %v588_v49 = vpop.f32.mrb[11].mxu1 }
 0x1f4   : > { %v620_v50 = vpack.c.bf16 %v588_v49, %v585_v46 }
 0x1f5   : > { %633 = vst [vmem:[#allocation2 + $0x28] sm:$0xff] %v621_v48 }
 0x1f6   : > { %632 = vst [vmem:[#allocation2 + $0x20] sm:$0xff] %v620_v50 }
 0x1f8   : > { %v980_v51 = vpop.f32.mrb[12].mxu1 }
 0x1f9   : > { %v601_v52 = vpop.f32.mrb[13].mxu1 }
 0x1fa   : > { %v981_v53 = vpop.f32.mrb[14].mxu1 }
 0x1fb   : > { %v623_v54 = vpack.c.bf16 %v981_v53, %v980_v51  ;;  %v604_v55 = vpop.f32.mrb[15].mxu1 }
 0x1fc   : > { %v622_v56 = vpack.c.bf16 %v604_v55, %v601_v52 }
 0x1fd   : > { %635 = vst [vmem:[#allocation2 + $0x38] sm:$0xff] %v623_v54 }
 0x1fe   : > { %634 = vst [vmem:[#allocation2 + $0x30] sm:$0xff] %v622_v56 }
 0x1ff PF: > { %p864_p5 = scmp.ne.s32.totalorder %s1084_s18, 1 }
 0x200   : > { %v640_v57 = vld [vmem:[#allocation2] sm:$0xff] (!%p864_p5)  ;;  %v641_v58 = vld [vmem:[#allocation2 + $0x8] sm:$0xff] (!%p864_p5)  ;;  %998 = vmatprep.mubr.bf16.mxu0 (!%p864_p5), %v251_v4  ;;  %1006 = vmatprep.mubr.bf16.mxu1 (!%p864_p5), %v255_v8  ;;  %v642_v59 = vld [vmem:[#allocation2 + $0x10] sm:$0xff] (!%p864_p5) }
 0x201   : > { %639 = sbr.rel (%p864_p5) target bundleno = 771 (0x303), region = 48  ;;  %982 = vmatprep.subr.bf16.mxu0 (!%p864_p5), %v640_v57  ;;  %1014 = vmatprep.subr.bf16.mxu1 (!%p864_p5), %v640_v57  ;;  %v643_v60 = vld [vmem:[#allocation2 + $0x18] sm:$0xff] (!%p864_p5)  ;;  %v644_v4 = vld [vmem:[#allocation2 + $0x20] sm:$0xff] (!%p864_p5)  ;;  %v645_v8 = vld [vmem:[#allocation2 + $0x28] sm:$0xff] (!%p864_p5) }
 0x202   : > { %983 = vmatpush3.bf16.msra.mxu0 (!%p864_p5), %v640_v57  ;;  %1022 = vmatpush3.bf16.msra.mxu1 (!%p864_p5), %v640_v57  ;;  %v865_v0 = vld [vmem:[%s1321_s4] ss:$0 sm:$0xff] (!%p864_p5) }
 0x203   : > { %984 = vmatprep.subr.bf16.mxu0 (!%p864_p5), %v641_v58  ;;  %1015 = vmatprep.subr.bf16.mxu1 (!%p864_p5), %v641_v58 }
 0x204   : > { %v647_v62 = vld [vmem:[#allocation2 + $0x38] sm:$0xff] (!%p864_p5) }
 0x205   : > { %v646_v61 = vld [vmem:[#allocation2 + $0x30] sm:$0xff] (!%p864_p5) }
 0x206   : > { %985 = vmatpush3.bf16.msra.mxu0 (!%p864_p5), %v641_v58  ;;  %1023 = vmatpush3.bf16.msra.mxu1 (!%p864_p5), %v641_v58 }
 0x207   : > { %986 = vmatprep.subr.bf16.mxu0 (!%p864_p5), %v642_v59  ;;  %1016 = vmatprep.subr.bf16.mxu1 (!%p864_p5), %v642_v59 }
 0x20a   : > { %987 = vmatpush3.bf16.msra.mxu0 %v642_v59  ;;  %1024 = vmatpush3.bf16.msra.mxu1 %v642_v59 }
 0x20b   : > { %988 = vmatprep.subr.bf16.mxu0 %v643_v60  ;;  %1017 = vmatprep.subr.bf16.mxu1 %v643_v60 }
 0x20e   : > { %989 = vmatpush3.bf16.msra.mxu0 %v643_v60  ;;  %1025 = vmatpush3.bf16.msra.mxu1 %v643_v60 }
 0x20f   : > { %990 = vmatprep.subr.bf16.mxu0 %v644_v4  ;;  %1018 = vmatprep.subr.bf16.mxu1 %v644_v4 }
 0x212   : > { %991 = vmatpush3.bf16.msra.mxu0 %v644_v4  ;;  %1026 = vmatpush3.bf16.msra.mxu1 %v644_v4 }
 0x213   : > { %992 = vmatprep.subr.bf16.mxu0 %v645_v8  ;;  %1019 = vmatprep.subr.bf16.mxu1 %v645_v8 }
 0x216   : > { %993 = vmatpush3.bf16.msra.mxu0 %v645_v8  ;;  %1027 = vmatpush3.bf16.msra.mxu1 %v645_v8 }
 0x217   : > { %994 = vmatprep.subr.bf16.mxu0 %v646_v61  ;;  %1020 = vmatprep.subr.bf16.mxu1 %v646_v61 }
 0x21a   : > { %995 = vmatpush3.bf16.msra.mxu0 %v646_v61  ;;  %1028 = vmatpush3.bf16.msra.mxu1 %v646_v61 }
 0x21b   : > { %996 = vmatprep.subr.bf16.mxu0 %v647_v62  ;;  %1021 = vmatprep.subr.bf16.mxu1 %v647_v62 }
 0x21e   : > { %997 = vmatpush3.bf16.msra.mxu0 %v647_v62  ;;  %1029 = vmatpush3.bf16.msra.mxu1 %v647_v62 }
 0x221   : > { %999 = vmatmul.mubr.bf16.vlgmr.msra.gmra.mrb[0].mxu0 %v252_v5  ;;  %1007 = vmatmul.mubr.bf16.vlgmr.msra.gmra.mrb[0].mxu1 %v256_v9 }
 0x222   : > { %1002 = vmatprep.mubr.bf16.mxu0 %v253_v6  ;;  %1010 = vmatprep.mubr.bf16.mxu1 %v257_v10 }
 0x229   : > { %1003 = vmatmul.mubr.bf16.gmra.mrb[4].mxu0 %v254_v7  ;;  %1011 = vmatmul.mubr.bf16.gmra.mrb[4].mxu1 %v258_v11 }
 0x2f4   : > { %v1000_v5 = vpop.f32.mrb[0].mxu0  ;;  %v1008_v63 = vpop.f32.mrb[0].mxu1 }
 0x2f5   : > { %v698_v2 = vadd.f32 %v1000_v5, %v865_v0  ;;  %v730_v9 = vadd.f32 %v1008_v63, %v865_v0  ;;  %v689_v12 = vpop.f32.mrb[1].mxu0  ;;  %v721_v13 = vpop.f32.mrb[1].mxu1 }
 0x2f6   : > { %v690_v6 = vadd.f32 %v865_v0, %v689_v12  ;;  %v722_v14 = vadd.f32 %v865_v0, %v721_v13  ;;  %v1001_v15 = vpop.f32.mrb[2].mxu0  ;;  %v1009_v10 = vpop.f32.mrb[2].mxu1 }
 0x2f7   : > { %754 = vst [vmem:[%s1322_s5 + $0x10] sm:$0xff] %v698_v2  ;;  %762 = vst [vmem:[%s1322_s5 + $0x50] sm:$0xff] %v730_v9  ;;  %v701_v1 = vadd.f32 %v1001_v15, %v865_v0  ;;  %v733_v3 = vadd.f32 %v1009_v10, %v865_v0  ;;  %v692_v7 = vpop.f32.mrb[3].mxu0  ;;  %v724_v11 = vpop.f32.mrb[3].mxu1 }
 0x2f8   : > { %752 = vst [vmem:[%s1322_s5] sm:$0xff] %v690_v6  ;;  %760 = vst [vmem:[%s1322_s5 + $0x40] sm:$0xff] %v722_v14  ;;  %v693_v16 = vadd.f32 %v865_v0, %v692_v7  ;;  %v725_v17 = vadd.f32 %v865_v0, %v724_v11 }
 0x2f9   : > { %755 = vst [vmem:[%s1322_s5 + $0x18] sm:$0xff] %v701_v1  ;;  %763 = vst [vmem:[%s1322_s5 + $0x58] sm:$0xff] %v733_v3 }
 0x2fa   : > { %753 = vst [vmem:[%s1322_s5 + $0x8] sm:$0xff] %v693_v16  ;;  %761 = vst [vmem:[%s1322_s5 + $0x48] sm:$0xff] %v725_v17 }
 0x2fc   : > { %v1004_v18 = vpop.f32.mrb[4].mxu0  ;;  %v1012_v19 = vpop.f32.mrb[4].mxu1 }
 0x2fd   : > { %v714_v20 = vadd.f32 %v1004_v18, %v865_v0  ;;  %v746_v21 = vadd.f32 %v1012_v19, %v865_v0  ;;  %v705_v22 = vpop.f32.mrb[5].mxu0  ;;  %v737_v23 = vpop.f32.mrb[5].mxu1 }
 0x2fe   : > { %v706_v24 = vadd.f32 %v865_v0, %v705_v22  ;;  %v738_v25 = vadd.f32 %v865_v0, %v737_v23  ;;  %v1005_v26 = vpop.f32.mrb[6].mxu0  ;;  %v1013_v27 = vpop.f32.mrb[6].mxu1 }
 0x2ff   : > { %758 = vst [vmem:[%s1322_s5 + $0x30] sm:$0xff] %v714_v20  ;;  %766 = vst [vmem:[%s1322_s5 + $0x70] sm:$0xff] %v746_v21  ;;  %v717_v29 = vadd.f32 %v1005_v26, %v865_v0  ;;  %v749_v30 = vadd.f32 %v1013_v27, %v865_v0  ;;  %v708_v31 = vpop.f32.mrb[7].mxu0  ;;  %v740_v32 = vpop.f32.mrb[7].mxu1 }
 0x300   : > { %756 = vst [vmem:[%s1322_s5 + $0x20] sm:$0xff] %v706_v24  ;;  %764 = vst [vmem:[%s1322_s5 + $0x60] sm:$0xff] %v738_v25  ;;  %v709_v33 = vadd.f32 %v865_v0, %v708_v31  ;;  %v741_v34 = vadd.f32 %v865_v0, %v740_v32 }
 0x301   : > { %759 = vst [vmem:[%s1322_s5 + $0x38] sm:$0xff] %v717_v29  ;;  %767 = vst [vmem:[%s1322_s5 + $0x78] sm:$0xff] %v749_v30 }
 0x302   : > { %757 = vst [vmem:[%s1322_s5 + $0x28] sm:$0xff] %v709_v33  ;;  %765 = vst [vmem:[%s1322_s5 + $0x68] sm:$0xff] %v741_v34 }
 0x303 PF: > { %s15_s20 = sadd.s32 1, %s1092_s20   ;;  %s1323_s18 = smov %s1088_s19 }
 0x304   : > { %p12_p6 = scmp.ge.s32.totalorder %s15_s20, 4   ;;  %s1324_s19 = smov %s1326_s21 }
 0x306   :  { %14 = sbr.rel (!%p12_p6) target bundleno = 2 (0x2), region = 79 }

</bundles_post_ra>
